<compile_context>
chip_gen: v6e
topology: v6e:2x2x1
jax: 0.10.0
libtpu: 0.0.40
codegen_flags: <defaults>
</compile_context>

<pallas_src>
import functools

import jax
import jax.numpy as jnp
from jax.experimental import pallas as pl
from jax.experimental.pallas import tpu as pltpu


def _round_up(x: int, m: int) -> int:
    return ((x + m - 1) // m) * m


def _vmem_capacity_bytes() -> int:
    """Per-core VMEM capacity; falls back to the v7x (smallest) value."""
    try:
        return int(pltpu.get_tpu_info().vmem_capacity_bytes)
    except Exception:
        return 64 * 1024 * 1024


def _pick_batch_tile(b: int, vmem_row_bytes: int, hbm_row_bytes: int,
                     vmem_cap: int) -> int:
    """Largest legal batch tile that (a) keeps the double-buffered working set
    well under the per-core VMEM, (b) prefers >= 4 grid steps for big batches
    (pipeline overlap + both v7x TensorCores), but (c) never shrinks a tile
    below ~512 KiB of HBM traffic, where per-step overhead would dominate."""
    budget = min(vmem_cap // 4, 32 * 1024 * 1024)
    tb = max(8, (budget // max(vmem_row_bytes, 1)) // 8 * 8)
    min_rows = max(8, _round_up(-(-512 * 1024 // max(hbm_row_bytes, 1)), 8))
    target = max(min_rows, _round_up(-(-b // 4), 8))
    tb = min(tb, target)
    if tb >= b:
        return b          # full-extent block is always a legal block dim
    return tb


def _mpnl_kernel_narrow(logits_ref, labels_ref, out_ref, *, true_b: int):
    """Small num_passages (< 128): relayout [TB, N] -> [N, TB] in-kernel so
    the batch axis is lane-dense; the passage reduction runs over sublanes.
    The f32 transpose is the best-supported relayout and lands on the XLU
    slot, which is otherwise idle in this (HBM-bound) kernel."""
    i = pl.program_id(0)
    tb = logits_ref.shape[0]

    logits = jnp.transpose(logits_ref[...].astype(jnp.float32))     # (N, TB)
    labels = jnp.transpose(labels_ref[...].astype(jnp.float32))     # (N, TB)

    # Numerically stable log-softmax over the passage (sublane) axis.
    row_max = jnp.max(logits, axis=0, keepdims=True)                 # (1, TB)
    shifted = logits - row_max
    log_sum = jnp.log(jnp.sum(jnp.exp(shifted), axis=0, keepdims=True))
    log_probs = shifted - log_sum

    # Positive-passage mask AND ragged-tail mask (columns >= true_b are the
    # unspecified contents of the last, partially out-of-bounds block).
    col = jax.lax.broadcasted_iota(jnp.int32, (1, tb), 1) + i * tb   # (1, TB)
    mask = jnp.logical_and(labels != 0.0, col < true_b)              # (N, TB)

    per_example = jnp.sum(jnp.where(mask, log_probs, 0.0),
                          axis=0, keepdims=True)                     # (1, TB)
    # Per-tile partial (scalar); the mean over the true batch happens once in
    # the wrapper.  Writing partials per tile keeps the grid axis "parallel".
    out_ref[...] = -jnp.sum(per_example, axis=1, keepdims=True)      # (1, 1)


def _mpnl_kernel_wide(logits_ref, labels_ref, out_ref, *, true_b: int):
    """Large num_passages (>= 128): passages are already lane-dense; reduce
    over the last axis.  Labels are compared in their native dtype (no f32
    upcast -> one fewer VPU convert per element)."""
    i = pl.program_id(0)
    tb = logits_ref.shape[0]

    logits = logits_ref[...].astype(jnp.float32)                     # (TB, N)
    row_max = jnp.max(logits, axis=1, keepdims=True)
    shifted = logits - row_max
    log_sum = jnp.log(jnp.sum(jnp.exp(shifted), axis=1, keepdims=True))
    log_probs = shifted - log_sum

    row = jax.lax.broadcasted_iota(jnp.int32, (tb, 1), 0) + i * tb   # (TB, 1)
    mask = jnp.logical_and(labels_ref[...] != 0, row < true_b)       # (TB, N)

    per_example = jnp.sum(jnp.where(mask, log_probs, 0.0),
                          axis=1, keepdims=True)                     # (TB, 1)
    out_ref[...] = -jnp.sum(per_example, axis=0, keepdims=True)      # (1, 1)


def mpnl_with_logits_loss(logits: jax.Array, labels: jax.Array,
                          *, batch_tile: int | None = None) -> jax.Array:
    """logits: [B, N] float (f32/bf16); labels: [B, N] any numeric (nonzero = positive)."""
    assert logits.ndim == 2 and logits.shape == labels.shape
    b, n = logits.shape
    vmem_cap = _vmem_capacity_bytes()
    narrow = n < 128

    # Dtype-aware per-batch-row VMEM footprint: double-buffered native-dtype
    # input blocks (minor dim padded to 128 lanes in VMEM) plus a conservative
    # allowance for the f32 intermediates the compute materializes.
    n_lane = _round_up(n, 128)
    per_row_vmem = 2 * n_lane * (logits.dtype.itemsize + labels.dtype.itemsize)
    if narrow:
        per_row_vmem += 2 * n_lane * 4            # pre-transpose f32 upcasts
        per_row_vmem += 4 * _round_up(n, 8) * 4   # lane-dense transposed temps
    else:
        per_row_vmem += 4 * n_lane * 4            # f32 log-softmax temporaries
    per_row_hbm = n * (logits.dtype.itemsize + labels.dtype.itemsize)

    if batch_tile is not None:
        tb = min(int(batch_tile), b)
        assert tb == b or (tb >= 8 and tb % 8 == 0), \
            "batch_tile must be a multiple of 8 (or >= batch size)"
    else:
        tb = _pick_batch_tile(b, per_row_vmem, per_row_hbm, vmem_cap)
    num_tiles = pl.cdiv(b, tb)

    # TODO(synk): add an inner passages grid axis (two-pass logsumexp) once
    # 8 rows x N x dtypes approaches ~1/3 of VMEM — only matters for extremely
    # wide passage axes on v7x's 64 MiB VMEM.

    kernel = functools.partial(
        _mpnl_kernel_narrow if narrow else _mpnl_kernel_wide, true_b=b)
    block = (tb, n)

    partials = pl.pallas_call(
        kernel,
        out_shape=jax.ShapeDtypeStruct((num_tiles, 1, 1), jnp.float32),
        grid_spec=pltpu.PrefetchScalarGridSpec(
            num_scalar_prefetch=0,
            grid=(num_tiles,),
            in_specs=[
                pl.BlockSpec(block, lambda i: (i, 0)),   # logits, native layout
                pl.BlockSpec(block, lambda i: (i, 0)),   # labels, native dtype
            ],
            # One scalar partial per tile -> no cross-iteration state, so the
            # batch grid axis is truly parallel (v7x: both TensorCores).
            out_specs=pl.BlockSpec((None, 1, 1), lambda i: (i, 0, 0)),
        ),
        compiler_params=pltpu.CompilerParams(
            dimension_semantics=("parallel",),
            vmem_limit_bytes=int(min(vmem_cap * 3 // 4, 96 * 1024 * 1024)),
        ),
    )(logits, labels)

    # Mean over the *true* batch size, applied exactly once.
    return jnp.sum(partials) * (1.0 / b)


def _reference(logits, labels):
    # Pure-JAX reference mirroring the PyTorch loop.
    log_probs = jax.nn.log_softmax(logits.astype(jnp.float32), axis=1)
    mask = (labels != 0).astype(jnp.float32)
    per_row = -jnp.sum(mask * log_probs, axis=1)
    return jnp.mean(per_row)


if __name__ == "__main__":
    key = jax.random.PRNGKey(0)
    k1, k2, k3, k4, k5, k6 = jax.random.split(key, 6)

    # --- Case 1: typical re2g shape (small num_passages -> in-kernel lane-dense
    #     relayout), f32 logits + int8 indicator labels (narrow label stream).
    b1, n1 = 4, 8
    logits1 = jax.random.normal(k1, (b1, n1), dtype=jnp.float32)
    labels1 = (jax.random.uniform(k2, (b1, n1)) > 0.6).astype(jnp.int8)
    labels1 = labels1.at[:, 0].set(1)  # at least one positive per row
    loss1 = jax.block_until_ready(mpnl_with_logits_loss(logits1, labels1))
    ref1 = _reference(logits1, labels1)
    assert jnp.allclose(loss1, ref1, atol=1e-4, rtol=1e-4), (loss1, ref1)

    # --- Case 2: wide passage axis (row-major path), bf16 logits + f32 labels,
    #     native-dtype label compare, single full-extent block.
    b2, n2 = 6, 256
    logits2 = jax.random.normal(k3, (b2, n2), dtype=jnp.bfloat16)
    labels2 = (jax.random.uniform(k4, (b2, n2)) > 0.9).astype(jnp.float32)
    labels2 = labels2.at[:, 0].set(1.0)
    loss2 = jax.block_until_ready(mpnl_with_logits_loss(logits2, labels2))
    ref2 = _reference(logits2, labels2)
    assert jnp.allclose(loss2, ref2, atol=1e-4, rtol=1e-4), (loss2, ref2)

    # --- Case 3: multi-tile "parallel" grid with a ragged batch tail
    #     (exercises per-tile partial outputs + in-kernel tail masking).
    b3, n3 = 37, 8
    logits3 = jax.random.normal(k5, (b3, n3), dtype=jnp.float32)
    labels3 = (jax.random.uniform(k6, (b3, n3)) > 0.5).astype(jnp.int32)
    labels3 = labels3.at[:, 0].set(1)
    loss3 = jax.block_until_ready(
        mpnl_with_logits_loss(logits3, labels3, batch_tile=16))
    ref3 = _reference(logits3, labels3)
    assert jnp.allclose(loss3, ref3, atol=1e-4, rtol=1e-4), (loss3, ref3)

    print("KERNEL_OK")
</pallas_src>

<mosaic_0001>
module attributes {stable_mosaic.version = 11 : i64} {
  func.func @_mpnl_kernel_narrow(%arg0: i32, %arg1: memref<4x8xf32, #tpu.memory_space<vmem>>, %arg2: memref<4x8xi8, #tpu.memory_space<vmem>>, %arg3: memref<1x1x1xf32, #tpu.memory_space<vmem>>) attributes {dimension_semantics = [#tpu.dimension_semantics<parallel>], iteration_bounds = array<i64: 1>, scalar_prefetch = 0 : i64, scratch_operands = 0 : i64, tpu.core_type = #tpu.core_type<tc>, window_params = [{transform_indices = @transform_0, window_bounds = array<i64: 4, 8>}, {transform_indices = @transform_1, window_bounds = array<i64: 4, 8>}, {transform_indices = @transform_2, window_bounds = array<i64: 1, 1, 1>}]} {
    %c0 = arith.constant 0 : index
    %c0_0 = arith.constant 0 : index
    %0 = vector.load %arg1[%c0, %c0_0] : memref<4x8xf32, #tpu.memory_space<vmem>>, vector<4x8xf32>
    %1 = tpu.transpose %0, [1, 0] : vector<4x8xf32> -> vector<8x4xf32>
    %c0_1 = arith.constant 0 : index
    %c0_2 = arith.constant 0 : index
    %2 = vector.load %arg2[%c0_1, %c0_2] : memref<4x8xi8, #tpu.memory_space<vmem>>, vector<4x8xi8>
    %3 = arith.sitofp %2 : vector<4x8xi8> to vector<4x8xf32>
    %4 = tpu.transpose %3, [1, 0] : vector<4x8xf32> -> vector<8x4xf32>
    %cst = arith.constant dense<0xFF800000> : vector<4xf32>
    %5 = vector.multi_reduction <maximumf>, %1, %cst [0] : vector<8x4xf32> to vector<4xf32>
    %6 = vector.shape_cast %5 : vector<4xf32> to vector<1x4xf32>
    %7 = vector.broadcast %6 : vector<1x4xf32> to vector<8x4xf32>
    %8 = arith.subf %1, %7 : vector<8x4xf32>
    %9 = math.exp %8 : vector<8x4xf32>
    %cst_3 = arith.constant dense<0.000000e+00> : vector<4xf32>
    %10 = vector.multi_reduction <add>, %9, %cst_3 [0] : vector<8x4xf32> to vector<4xf32>
    %11 = vector.shape_cast %10 : vector<4xf32> to vector<1x4xf32>
    %12 = math.log %11 : vector<1x4xf32>
    %13 = vector.broadcast %12 : vector<1x4xf32> to vector<8x4xf32>
    %14 = arith.subf %8, %13 : vector<8x4xf32>
    %15 = tpu.iota {dimensions = array<i32: 1>} : vector<1x4xi32>
    %c4_i32 = arith.constant 4 : i32
    %16 = arith.muli %arg0, %c4_i32 : i32
    %17 = vector.broadcast %16 : i32 to vector<1x4xi32>
    %18 = arith.addi %15, %17 : vector<1x4xi32>
    %cst_4 = arith.constant 0.000000e+00 : f32
    %19 = vector.broadcast %cst_4 : f32 to vector<8x4xf32>
    %20 = arith.cmpf one, %4, %19 : vector<8x4xf32>
    %c4_i32_5 = arith.constant 4 : i32
    %21 = vector.broadcast %c4_i32_5 : i32 to vector<1x4xi32>
    %22 = arith.cmpi slt, %18, %21 : vector<1x4xi32>
    %23 = vector.broadcast %22 : vector<1x4xi1> to vector<8x4xi1>
    %24 = arith.andi %20, %23 : vector<8x4xi1>
    %cst_6 = arith.constant 0.000000e+00 : f32
    %25 = vector.broadcast %cst_6 : f32 to vector<8x4xf32>
    %26 = arith.select %24, %14, %25 : vector<8x4xi1>, vector<8x4xf32>
    %cst_7 = arith.constant dense<0.000000e+00> : vector<4xf32>
    %27 = vector.multi_reduction <add>, %26, %cst_7 [0] : vector<8x4xf32> to vector<4xf32>
    %28 = vector.shape_cast %27 : vector<4xf32> to vector<1x4xf32>
    %cst_8 = arith.constant dense<0.000000e+00> : vector<1xf32>
    %29 = vector.multi_reduction <add>, %28, %cst_8 [1] : vector<1x4xf32> to vector<1xf32>
    %30 = vector.shape_cast %29 : vector<1xf32> to vector<1x1xf32>
    %cst_9 = arith.constant 0.000000e+00 : f32
    %31 = vector.broadcast %cst_9 : f32 to vector<1x1xf32>
    %32 = arith.subf %31, %30 : vector<1x1xf32>
    %c0_10 = arith.constant 0 : index
    %c0_11 = arith.constant 0 : index
    %c0_12 = arith.constant 0 : index
    %33 = vector.load %arg3[%c0_10, %c0_11, %c0_12] : memref<1x1x1xf32, #tpu.memory_space<vmem>>, vector<1x1x1xf32>
    %34 = vector.shape_cast %33 : vector<1x1x1xf32> to vector<1x1xf32>
    %35 = vector.shape_cast %32 : vector<1x1xf32> to vector<1x1x1xf32>
    tpu.vector_store %arg3[%c0_10, %c0_11, %c0_12], %35 {strides = array<i32>} : memref<1x1x1xf32, #tpu.memory_space<vmem>>, vector<1x1x1xf32>,
    return
  }
  func.func @transform_0(%arg0: i32) -> (i32, i32) {
    %c0_i32 = arith.constant 0 : i32
    %c0_i32_0 = arith.constant 0 : i32
    return %arg0, %c0_i32 : i32, i32
  }
  func.func @transform_1(%arg0: i32) -> (i32, i32) {
    %c0_i32 = arith.constant 0 : i32
    %c0_i32_0 = arith.constant 0 : i32
    return %arg0, %c0_i32 : i32, i32
  }
  func.func @transform_2(%arg0: i32) -> (i32, i32, i32) {
    %c0_i32 = arith.constant 0 : i32
    %c0_i32_0 = arith.constant 0 : i32
    %c0_i32_1 = arith.constant 0 : i32
    return %arg0, %c0_i32, %c0_i32_0 : i32, i32, i32
  }
}

</mosaic_0001>

<bundles_post_ra>
// kernel: tpu_custom_call.1
= control target key start
LH: loop header
LB: loop body
LE: loop exit
PB: predicated region body
PF: predicated region fallthrough
CT: control target
= control target key end

     0   :  { %7 = vsyncpa [#allocation3], 0  ;;  %s233_s0 = inlined_call_operand.hbm [shape: f32[4,8], index: 0, kind: input, shape index: {}]   ;;  %s234_s1 = inlined_call_operand.vmem [shape: s8[4,8], index: 1, kind: input, shape index: {}]   ;;  %s235_s2 = inlined_call_operand.hbm [shape: f32[1,1,1], index: 2, kind: output, shape index: {}]  }
   0x1   :  { %8 = vsyncpa [#allocation4], 0  ;;  %s203_s9 = smov [#allocation2]  }
   0x2   :  { %s15_s10 = sshll.u32 %s203_s9, 4  ;;  %s16_s10 = int_to_ptr.vmem [resolvable:$true] %s15_s10 }
   0x3   :  { %s167_s11 = scalar_lea.vmem %s16_s10, 64  ;;  %p172_p1 = scmp.lt.s32.totalorder %s16_s10, %s16_s10 }
   0x4   :  { %p168_p0 = scmp.ne.s32.totalorder %s16_s10, %s167_s11  ;;  %p173_p2 = scmp.lt.s32.totalorder %s167_s11, %s167_s11 }
   0x6   :  { %p174_p3 = por %p173_p2, %p172_p1 }
   0x8   :  { %p175_p4 = pnand %p174_p3, %p168_p0 }
   0xa   :  { %178 = shalt.err (!%p175_p4)
}
   0xb   :  { %18 = dma.hbm_to_vmem [thread:$0]  %s233_s0, 64, %s16_s10, [#allocation3]  }
   0xc   :  { %199 = dma.done.wait [#allocation3], 64  }
   0xd   :  { %200 = vsyncadd [#allocation3], 4294967232  ;;  %v24_v0 = vld [vmem:[#allocation2] sm:$0xf]  ;;  %vm92_vm0 = vcmask 31744   ;;  %v113_v22 = vlaneseq  ;;  %s204_s0 = smov [#allocation5]  }
   0xe   :  { %v57_v1 = vld [vmem:[%s234_s1] sm:$0x1]  ;;  %25 = vxpose.xlu0.b32.start.end [1/1] (short) (narrow) %v24_v0, 8  ;;  %s143_s1 = sshll.u32 %s204_s0, 4  ;;  %vm135_vm4 = vcmask 0   ;;  %s144_s1 = int_to_ptr.vmem [resolvable:$true] %s143_s1 }
   0xf   :  { %v58_v2 = vunpack.c.0.s8 %v57_v1  ;;  %v114_v23 = vand.u32 127, %v113_v22  ;;  %s179_s16 = scalar_lea.vmem %s144_s1, 16  ;;  %s183_s17 = scalar_lea.vmem %s144_s1, 32 }
  0x10   :  { %p180_p5 = scmp.ne.s32.totalorder %s144_s1, %s179_s16  ;;  %p184_p6 = scmp.lt.s32.totalorder %s144_s1, %s144_s1 }
  0x11   :  { %v59_v3 = vcvt.s32.f32 %v58_v2  ;;  %vm119_vm1 = vcmp.lt.s32.totalorder %v114_v23, 4  ;;  %p185_p7 = scmp.lt.s32.totalorder %s183_s17, %s179_s16 }
  0x13   :  { %60 = vxpose.xlu0.b32.start.end [1/1] (short) (narrow) %v59_v3, 8  ;;  %p186_p8 = por %p185_p7, %p184_p6 }
  0x15   :  { %p187_p9 = pnand %p186_p8, %p180_p5 }
  0x8a   :  { %v41_v4 = vpop.trf.xlu0 }
  0x8b   :  { %v93_v5 = vsel %vm92_vm0, %v41_v4, -inf }
  0x8c   :  { %v94_v6 = vrot.slane %v93_v5, 4 }
  0x8e   :  { %v95_v7 = vmax.f32 %v93_v5, %v94_v6 }
  0x8f   :  { %v76_v24 = vpop.trf.xlu0 }
  0x90   :  { %v96_v8 = vrot.slane %v95_v7, 2  ;;  %vm118_vm2 = vcmp.ne.f32.partialorder %v76_v24, 0.0 }
  0x91   :  { %vm122_vm3 = vmand %vm118_vm2, %vm119_vm1 }
  0x92   :  { %v97_v9 = vmax.f32 %v95_v7, %v96_v8 }
  0x94   :  { %v98_v10 = vrot.slane %v97_v9, 1 }
  0x96   :  { %v99_v11 = vmax.f32 %v97_v9, %v98_v10 }
  0x98   :  { %v100_v12 = vsub.f32 %v41_v4, %v99_v11 }
  0x9a   :  { %v101_v13 = vmul.f32 1.442695, %v100_v12 }
  0x9c   :  { %155 = vpow2.f32 %v101_v13 }
  0xa9   :  { %v156_v14 = vpop.eup %155 }
  0xaa   :  { %v103_v15 = vsel %vm92_vm0, %v156_v14, 0.0 }
  0xab   :  { %v104_v16 = vrot.slane %v103_v15, 4 }
  0xad   :  { %v105_v17 = vadd.f32 %v104_v16, %v103_v15 }
  0xaf   :  { %v106_v18 = vrot.slane %v105_v17, 2 }
  0xb1   :  { %v107_v19 = vadd.f32 %v106_v18, %v105_v17 }
  0xb3   :  { %v108_v20 = vrot.slane %v107_v19, 1 }
  0xb5   :  { %v109_v21 = vadd.f32 %v108_v20, %v107_v19 }
  0xb7   :  { %157 = vlog2.f32 %v109_v21 }
  0xc4   :  { %v158_v25 = vpop.eup %157 }
  0xc5   :  { %v111_v26 = vmul.f32 0.6931472, %v158_v25 }
  0xc7   :  { %v112_v27 = vsub.f32 %v100_v12, %v111_v26 }
  0xc9   :  { %v123_v28 = vsel %vm122_vm3, %v112_v27, 0.0 }
  0xca   :  { %v124_v29 = vsel %vm92_vm0, %v123_v28, 0.0 }
  0xcb   :  { %v125_v30 = vrot.slane %v124_v29, 4 }
  0xcd   :  { %v126_v31 = vadd.f32 %v125_v30, %v124_v29 }
  0xcf   :  { %v127_v32 = vrot.slane %v126_v31, 2 }
  0xd1   :  { %v128_v33 = vadd.f32 %v127_v32, %v126_v31 }
  0xd3   :  { %v129_v34 = vrot.slane %v128_v33, 1 }
  0xd5   :  { %v130_v35 = vadd.f32 %v129_v34, %v128_v33 }
  0xd7   :  { %v131_v36 = vsel %vm92_vm0, %v130_v35, 0.0 }
  0xd8   :  { %132 = vadd.xlane.f32.xlu1 %v131_v36 }
 0x161   :  { %v133_v37 = vpop.xlane.xlu1 %132 }
 0x162   :  { %v134_v38 = vsub.f32 0.0, %v133_v37 }
 0x164   :  { %136 = vst.msk [vmem:[#allocation5] sm:$0x1] %vm135_vm4, %v134_v38 }
 0x165   :  { %190 = shalt.err (!%p187_p9)
}
 0x166   :  { %146 = dma.vmem_to_hbm [thread:$0]  %s144_s1, 16, %s235_s2, [#allocation4]  }
 0x167   :  { %201 = dma.done.wait [#allocation4], 16  }
 0x168   :  { %202 = vsyncadd [#allocation4], 4294967280 }
 0x169   :  { %150 = vsyncpa [#allocation3], 1 }
 0x16a   :  { %151 = vsyncpa [#allocation4], 1 }

</bundles_post_ra>
